<compile_context>
chip_gen: v7x
topology: tpu7x:2x2x1
jax: 0.10.0
libtpu: 0.0.40
codegen_flags: <defaults>
</compile_context>

<pallas_src>
import functools

import jax
import jax.numpy as jnp
from jax import lax
from jax.experimental import pallas as pl
from jax.experimental.pallas import tpu as pltpu

_HALO = 128  # extra time-columns carried per tile to cover the K > stride overlap


def _encoder_kernel(x_ref, h_ref, w_ref, b_ref, o_ref, xext_ref):
    # x_ref   : (S, tile_T)        input window, time on lanes (lane-dense)
    # h_ref   : (S, HALO)          halo: the next HALO time-columns
    # w_ref   : (N, K_pad)         conv weight, zero-padded to K_pad = q*S
    # b_ref   : (N, 1)             bias
    # o_ref   : (N, tile_T)        output tile, PyTorch layout, time on lanes
    # xext_ref: (S, tile_T + HALO) VMEM scratch for the extended window
    s, tile_t = x_ref.shape
    n, k_pad = w_ref.shape
    q = k_pad // s

    # Assemble the extended (tile + halo) window once in VMEM.
    xext_ref[:, :tile_t] = x_ref[...]
    xext_ref[:, tile_t:] = h_ref[...]

    # Conv as q phase matmuls: out[n, t] += W[n, p*S + s] * x[(t+p)*S + s]
    acc = jnp.zeros((n, tile_t), dtype=jnp.float32)
    for p in range(q):                               # q is small and static (e.g. 2)
        wp = w_ref[:, p * s:(p + 1) * s]             # (N, S)
        xp = xext_ref[:, p:p + tile_t]               # (S, tile_T), static lane-offset slice
        acc = acc + jnp.dot(wp, xp, preferred_element_type=jnp.float32)
    acc = acc + b_ref[...].astype(jnp.float32)

    inv_sqrt2 = jnp.float32(0.7071067811865476)
    gelu = 0.5 * acc * (1.0 + lax.erf(acc * inv_sqrt2))   # exact GELU (nn.GELU default)
    o_ref[...] = gelu.astype(o_ref.dtype)


def audio_encoder(x, weight, bias=None, *, stride, tile_t=2048):
    """
    x:      (B, T)   float32 waveform
    weight: (N, K)   Conv1d weight with the in_channels=1 axis squeezed out
    bias:   (N,) or None
    returns (B, N, T_out) matching PyTorch AudioEncoder.forward
    """
    B, T = x.shape
    N, K = weight.shape
    S = int(stride)
    assert K >= 1 and S >= 1 and T >= K
    assert K <= _HALO * S, "kernel_size must be <= 128*stride for this kernel"

    T_out = (T - K) // S + 1
    q = -(-K // S)                        # ceil(K / S) phases
    K_pad = q * S

    # 128-aligned time tile (lane-dense output stores), clamped for small inputs.
    tile_t = max(128, min(int(tile_t), ((T_out + 127) // 128) * 128))
    assert tile_t % 128 == 0
    n_tiles = -(-T_out // tile_t)

    # Time-on-lanes input layout: x2t[b, s, c] = x_pad[b, c*S + s]
    C = n_tiles * tile_t + _HALO          # columns (frames of S samples), incl. halo room
    T_pad = C * S
    assert T_pad >= T
    x_pad = jnp.pad(x, ((0, 0), (0, T_pad - T)))
    x2t = jnp.transpose(x_pad.reshape(B, C, S), (0, 2, 1))          # (B, S, C)

    w_pad = jnp.pad(weight, ((0, 0), (0, K_pad - K))).astype(x.dtype)   # (N, K_pad)
    if bias is None:
        bias = jnp.zeros((N,), dtype=x.dtype)
    b2 = bias.reshape(N, 1).astype(x.dtype)                             # (N, 1)

    r = tile_t // _HALO   # halo for tile j = columns [(j+1)*tile_t, (j+1)*tile_t + HALO)

    out = pl.pallas_call(
        _encoder_kernel,
        out_shape=jax.ShapeDtypeStruct((B, N, T_out), x.dtype),
        grid=(B, n_tiles),
        in_specs=[
            pl.BlockSpec((None, S, tile_t), lambda b, j: (b, 0, j)),          # main window
            pl.BlockSpec((None, S, _HALO), lambda b, j: (b, 0, (j + 1) * r)),  # halo window
            pl.BlockSpec((N, K_pad), lambda b, j: (0, 0)),                    # resident weight
            pl.BlockSpec((N, 1), lambda b, j: (0, 0)),                        # resident bias
        ],
        out_specs=pl.BlockSpec((None, N, tile_t), lambda b, j: (b, 0, j)),
        scratch_shapes=[pltpu.VMEM((S, tile_t + _HALO), x.dtype)],
        compiler_params=pltpu.CompilerParams(
            dimension_semantics=("parallel", "parallel")),
    )(x2t, x2t, w_pad, b2)

    return out


def _reference(x, weight, bias, *, stride):
    # pure-JAX reference using lax conv (NCW) + exact GELU
    lhs = x[:, None, :]                                    # (B, 1, T)
    rhs = weight[:, None, :]                               # (N, 1, K)
    y = lax.conv_general_dilated(
        lhs, rhs, window_strides=(stride,), padding="VALID",
        dimension_numbers=("NCH", "OIH", "NCH"))
    y = y + bias[None, :, None]
    return 0.5 * y * (1.0 + lax.erf(y * jnp.float32(0.7071067811865476)))


def _check(B, N, K, S, T, tile_t, key):
    kx, kw, kb = jax.random.split(key, 3)
    x = jax.random.normal(kx, (B, T), dtype=jnp.float32)
    weight = jax.random.normal(kw, (N, K), dtype=jnp.float32) * 0.1
    bias = jax.random.normal(kb, (N,), dtype=jnp.float32) * 0.1

    enc = jax.jit(functools.partial(audio_encoder, stride=S, tile_t=tile_t))
    y = jax.block_until_ready(enc(x, weight, bias))

    y_ref = _reference(x, weight, bias, stride=S)
    T_out = (T - K) // S + 1
    assert y.shape == (B, N, T_out)
    assert jnp.allclose(y, y_ref, atol=2e-5, rtol=2e-5)


if __name__ == "__main__":
    key = jax.random.PRNGKey(0)
    k1, k2 = jax.random.split(key)

    # small, deterministic config: single (partial) time tile
    _check(B=2, N=32, K=16, S=8, T=136, tile_t=2048, key=k1)
    # multi-tile config (exercises the halo BlockSpec and the masked last tile)
    _check(B=2, N=32, K=16, S=8, T=2064, tile_t=128, key=k2)

    print("KERNEL_OK")
</pallas_src>

<mosaic_0001>
module attributes {stable_mosaic.version = 11 : i64} {
  func.func @_encoder_kernel(%arg0: i32, %arg1: i32, %arg2: memref<1x8x128xf32, #tpu.memory_space<vmem>>, %arg3: memref<1x8x128xf32, #tpu.memory_space<vmem>>, %arg4: memref<32x16xf32, #tpu.memory_space<vmem>>, %arg5: memref<32x1xf32, #tpu.memory_space<vmem>>, %arg6: memref<1x32x128xf32, #tpu.memory_space<vmem>>, %arg7: memref<8x256xf32, #tpu.memory_space<vmem>>) attributes {dimension_semantics = [#tpu.dimension_semantics<parallel>, #tpu.dimension_semantics<parallel>], iteration_bounds = array<i64: 2, 1>, scalar_prefetch = 0 : i64, scratch_operands = 1 : i64, tpu.core_type = #tpu.core_type<tc>, window_params = [{transform_indices = @transform_0, window_bounds = array<i64: 1, 8, 128>}, {transform_indices = @transform_1, window_bounds = array<i64: 1, 8, 128>}, {pipeline_mode = #tpu.pipeline_mode<synchronous>, transform_indices = @transform_2, window_bounds = array<i64: 32, 16>}, {pipeline_mode = #tpu.pipeline_mode<synchronous>, transform_indices = @transform_3, window_bounds = array<i64: 32, 1>}, {transform_indices = @transform_4, window_bounds = array<i64: 1, 32, 128>}]} {
    %c0 = arith.constant 0 : index
    %c0_0 = arith.constant 0 : index
    %c0_1 = arith.constant 0 : index
    %0 = vector.load %arg2[%c0, %c0_0, %c0_1] : memref<1x8x128xf32, #tpu.memory_space<vmem>>, vector<1x8x128xf32>
    %1 = vector.shape_cast %0 : vector<1x8x128xf32> to vector<8x128xf32>
    %c0_2 = arith.constant 0 : index
    %c0_3 = arith.constant 0 : index
    %2 = vector.load %arg7[%c0_2, %c0_3] : memref<8x256xf32, #tpu.memory_space<vmem>>, vector<8x128xf32>
    tpu.vector_store %arg7[%c0_2, %c0_3], %1 {strides = array<i32>} : memref<8x256xf32, #tpu.memory_space<vmem>>, vector<8x128xf32>,
    %c0_4 = arith.constant 0 : index
    %c0_5 = arith.constant 0 : index
    %c0_6 = arith.constant 0 : index
    %3 = vector.load %arg3[%c0_4, %c0_5, %c0_6] : memref<1x8x128xf32, #tpu.memory_space<vmem>>, vector<1x8x128xf32>
    %4 = vector.shape_cast %3 : vector<1x8x128xf32> to vector<8x128xf32>
    %c0_7 = arith.constant 0 : index
    %c128 = arith.constant 128 : index
    %5 = vector.load %arg7[%c0_7, %c128] : memref<8x256xf32, #tpu.memory_space<vmem>>, vector<8x128xf32>
    tpu.vector_store %arg7[%c0_7, %c128], %4 {strides = array<i32>} : memref<8x256xf32, #tpu.memory_space<vmem>>, vector<8x128xf32>,
    %cst = arith.constant 0.000000e+00 : f32
    %6 = vector.broadcast %cst : f32 to vector<32x128xf32>
    %c0_8 = arith.constant 0 : index
    %c0_9 = arith.constant 0 : index
    %7 = vector.load %arg4[%c0_8, %c0_9] : memref<32x16xf32, #tpu.memory_space<vmem>>, vector<32x8xf32>
    %c0_10 = arith.constant 0 : index
    %c0_11 = arith.constant 0 : index
    %8 = vector.load %arg7[%c0_10, %c0_11] : memref<8x256xf32, #tpu.memory_space<vmem>>, vector<8x128xf32>
    %cst_12 = arith.constant dense<0.000000e+00> : vector<32x128xf32>
    %9 = tpu.matmul %7, %8, %cst_12 {dimension_numbers = #tpu.dot_dimension_numbers<[1], [0], [0], [1], [0, 0, 1, 1], [], []>} : vector<32x8xf32>, vector<8x128xf32>, vector<32x128xf32> -> vector<32x128xf32>
    %10 = arith.addf %6, %9 : vector<32x128xf32>
    %c0_13 = arith.constant 0 : index
    %c8 = arith.constant 8 : index
    %11 = vector.load %arg4[%c0_13, %c8] : memref<32x16xf32, #tpu.memory_space<vmem>>, vector<32x8xf32>
    %c0_14 = arith.constant 0 : index
    %c1 = arith.constant 1 : index
    %12 = vector.load %arg7[%c0_14, %c1] : memref<8x256xf32, #tpu.memory_space<vmem>>, vector<8x128xf32>
    %cst_15 = arith.constant dense<0.000000e+00> : vector<32x128xf32>
    %13 = tpu.matmul %11, %12, %cst_15 {dimension_numbers = #tpu.dot_dimension_numbers<[1], [0], [0], [1], [0, 0, 1, 1], [], []>} : vector<32x8xf32>, vector<8x128xf32>, vector<32x128xf32> -> vector<32x128xf32>
    %14 = arith.addf %10, %13 : vector<32x128xf32>
    %c0_16 = arith.constant 0 : index
    %c0_17 = arith.constant 0 : index
    %15 = vector.load %arg5[%c0_16, %c0_17] : memref<32x1xf32, #tpu.memory_space<vmem>>, vector<32x1xf32>
    %16 = vector.broadcast %15 : vector<32x1xf32> to vector<32x128xf32>
    %17 = arith.addf %14, %16 : vector<32x128xf32>
    %cst_18 = arith.constant 5.000000e-01 : f32
    %18 = vector.broadcast %cst_18 : f32 to vector<32x128xf32>
    %19 = arith.mulf %18, %17 : vector<32x128xf32>
    %cst_19 = arith.constant 0.707106769 : f32
    %20 = vector.broadcast %cst_19 : f32 to vector<32x128xf32>
    %21 = arith.mulf %17, %20 : vector<32x128xf32>
    %22 = math.erf %21 : vector<32x128xf32>
    %cst_20 = arith.constant 1.000000e+00 : f32
    %23 = vector.broadcast %cst_20 : f32 to vector<32x128xf32>
    %24 = arith.addf %23, %22 : vector<32x128xf32>
    %25 = arith.mulf %19, %24 : vector<32x128xf32>
    %c0_21 = arith.constant 0 : index
    %c0_22 = arith.constant 0 : index
    %c0_23 = arith.constant 0 : index
    %26 = vector.load %arg6[%c0_21, %c0_22, %c0_23] : memref<1x32x128xf32, #tpu.memory_space<vmem>>, vector<1x32x128xf32>
    %27 = vector.shape_cast %26 : vector<1x32x128xf32> to vector<32x128xf32>
    %28 = vector.shape_cast %25 : vector<32x128xf32> to vector<1x32x128xf32>
    tpu.vector_store %arg6[%c0_21, %c0_22, %c0_23], %28 {strides = array<i32>} : memref<1x32x128xf32, #tpu.memory_space<vmem>>, vector<1x32x128xf32>,
    return
  }
  func.func @transform_0(%arg0: i32, %arg1: i32) -> (i32, i32, i32) {
    %c0_i32 = arith.constant 0 : i32
    %c0_i32_0 = arith.constant 0 : i32
    return %arg0, %c0_i32, %arg1 : i32, i32, i32
  }
  func.func @transform_1(%arg0: i32, %arg1: i32) -> (i32, i32, i32) {
    %c1_i32 = arith.constant 1 : i32
    %0 = arith.addi %arg1, %c1_i32 : i32
    %c1_i32_0 = arith.constant 1 : i32
    %1 = arith.muli %0, %c1_i32_0 : i32
    %c0_i32 = arith.constant 0 : i32
    %c0_i32_1 = arith.constant 0 : i32
    return %arg0, %c0_i32, %1 : i32, i32, i32
  }
  func.func @transform_2(%arg0: i32, %arg1: i32) -> (i32, i32) {
    %c0_i32 = arith.constant 0 : i32
    %c0_i32_0 = arith.constant 0 : i32
    %c0_i32_1 = arith.constant 0 : i32
    return %c0_i32, %c0_i32_0 : i32, i32
  }
  func.func @transform_3(%arg0: i32, %arg1: i32) -> (i32, i32) {
    %c0_i32 = arith.constant 0 : i32
    %c0_i32_0 = arith.constant 0 : i32
    %c0_i32_1 = arith.constant 0 : i32
    return %c0_i32, %c0_i32_0 : i32, i32
  }
  func.func @transform_4(%arg0: i32, %arg1: i32) -> (i32, i32, i32) {
    %c0_i32 = arith.constant 0 : i32
    %c0_i32_0 = arith.constant 0 : i32
    return %arg0, %c0_i32, %arg1 : i32, i32, i32
  }
}

</mosaic_0001>

<bundles_post_ra>
// kernel: audio_encoder.1
= control target key start
LH: loop header
LB: loop body
LE: loop exit
PB: predicated region body
PF: predicated region fallthrough
CT: control target
= control target key end

     0   :  { %s784_s15 = smov 0   ;;  %s786_s16 = smov 0   ;;  %s856_s0 = inlined_call_operand.vmem [shape: f32[2,8,256], index: 0, kind: input, shape index: {}, may-alias: {0,1}]   ;;  %s857_s1 = inlined_call_operand.vmem [shape: f32[2,8,256], index: 1, kind: input, shape index: {}, may-alias: {0,1}]   ;;  %s858_s2 = inlined_call_operand.vmem [shape: f32[32,16], index: 2, kind: input, shape index: {}]   ;;  %s859_s3 = inlined_call_operand.vmem [shape: f32[32,1], index: 3, kind: input, shape index: {}]   ;;  %s860_s4 = inlined_call_operand.vmem [shape: f32[2,32,16], index: 4, kind: output, shape index: {}]  }
   0x1   :  { %s788_s17 = smov 0  }
   0x2 LB: > { %s26_s18 = sadd.s32 1, %s750_s16  ;;  %p643_p0 = scmp.ge.s32.totalorder %s754_s17, 1  ;;  %s754_s17 = sphi %s788_s17, %s14_s17   ;;  %s750_s16 = sphi %s786_s16, %s862_s16   ;;  %s746_s15 = sphi %s784_s15, %s861_s15  }
   0x3   : > { %p28_p1 = scmp.ge.s32.totalorder %s26_s18, 2  ;;  %p200_p2 = scmp.lt.s32.totalorder %s754_s17, 3 }
   0x5   : > { %s864_s18 = smov (%p28_p1, %s26_s18), 0  ;;  %p201_p3 = pnand %p643_p0, %p200_p2 }
   0x6   : > { %p241_p4 = scmp.lt.s32.totalorder (!%p201_p3), %s746_s15, 1  ;;  %v271_v0 = vld [vmem:[%s858_s2] sm:$0xff] (!%p201_p3)  ;;  %vm299_vm0 = vcmask (!%p201_p3), 64512   ;;  %s756_s21 = smov (!%p201_p3), 120   ;;  %v272_v1 = vld [vmem:[%s858_s2 + $0x8] sm:$0xff] (!%p201_p3)  ;;  %v757_v3 = vmov (!%p201_p3), 0  }
   0x7   : > { %204 = sbr.rel (%p201_p3) target bundleno = 379 (0x17b), region = 36  ;;  %685 = vmatprep.mubr.msk.f32.mxu0 (!%p201_p3), %vm299_vm0, %v271_v0  ;;  %282 = vrot.lane.b32.xlu1 (!%p201_p3), %v271_v0, %s756_s21  ;;  %s758_s29 = smov (!%p201_p3), 127   ;;  %v274_v4 = vld [vmem:[%s858_s2 + $0x18] sm:$0xff] (!%p201_p3)  ;;  %v273_v6 = vld [vmem:[%s858_s2 + $0x10] sm:$0xff] (!%p201_p3)  ;;  %v487_v7 = vld [vmem:[%s859_s3 + $0x8] sm:$0xff] (!%p201_p3)  ;;  %vm296_vm1 = vcmask (!%p201_p3), 1039360  }
   0x8   : > { %722 = vset.pattern.permute.xlu0 (!%p201_p3), %v757_v3  ;;  %723 = vset.pattern.permute.xlu1 (!%p201_p3), %v757_v3  ;;  %v488_v8 = vld [vmem:[%s859_s3 + $0x10] sm:$0xff] (!%p201_p3)  ;;  %v486_v9 = vld [vmem:[%s859_s3] sm:$0xff] (!%p201_p3)  ;;  %v489_v10 = vld [vmem:[%s859_s3 + $0x18] sm:$0xff] (!%p201_p3) }
   0xb   : > { %284 = vrot.lane.b32.xlu1 (!%p201_p3), %v272_v1, %s756_s21 }
   0xe   : > { %s866_s15 = smov (!%p241_p4, %s746_s15), 1 }
   0xf   : > { %s660_s24 = sshll.u32 %s866_s15, 4  ;;  %288 = vrot.lane.b32.xlu1 %v274_v4, %s756_s21 }
  0x10   : > { %s248_s27 = scalar_lea.vmem %s856_s0, %s660_s24  ;;  %s662_s28 = sadd.s32 8, %s660_s24 }
  0x11   : > { %v267_v2 = vld [vmem:[%s248_s27] sm:$0xff]  ;;  %s257_s6 = scalar_lea.vmem %s857_s1, %s662_s28 }
  0x12   : > { %292 = vrot.lane.b32.xlu0 %v267_v2, %s758_s29  ;;  %683 = vmatprep.subr.mxu0 %v267_v2  ;;  %v269_v5 = vld [vmem:[%s257_s6] sm:$0xff] }
  0x13   : > { %684 = vmatpush3.msra.mxu0 %v267_v2  ;;  %497 = vperm.xlu1 %723, %v487_v7  }
  0x14   : > { %686 = vmatmul.mubr.msk.f32.vlgmr.msra.gmra.mrb[0].mxu0 %vm299_vm0, %v272_v1 }
  0x15   : > { %688 = vmatprep.mubr.msk.f32.mxu0 %vm299_vm0, %v273_v6 }
  0x16   : > { %294 = vrot.lane.b32.xlu0 %v269_v5, %s758_s29 }
  0x17   : > { %502 = vperm.xlu1 %723, %v488_v8  }
  0x18   : > { %689 = vmatmul.mubr.msk.f32.gmra.mrb[2].mxu0 %vm299_vm0, %v274_v4 }
  0x1a   : > { %286 = vrot.lane.b32.xlu0 %v273_v6, %s756_s21  ;;  %s663_s21 = sshll.u32 %s866_s15, 5 }
  0x1b   : > { %s266_s26 = scalar_lea.vmem %s860_s4, %s663_s21 }
  0x1e   : > { %492 = vperm.xlu0 %722, %v486_v9  }
  0x22   : > { %507 = vperm.xlu0 %722, %v489_v10  }
  0x79   : > { %v283_v11 = vpop.permute.xlu1 %282 }
  0x7a   : > { %677 = vmatprep.mubr.msk.f32.mxu1 %vm299_vm0, %v283_v11 }
  0x7d   : > { %v285_v13 = vpop.permute.xlu1 %284 }
  0x81   : > { %v289_v17 = vpop.permute.xlu1 %288 }
  0x84   : > { %v293_v12 = vpop.permute.xlu0 %292 }
  0x88   : > { %v295_v14 = vpop.permute.xlu0 %294 }
  0x89   : > { %v297_v15 = vsel %vm296_vm1, %v293_v12, %v295_v14 }
  0x8a   : > { %675 = vmatprep.subr.mxu1 %v297_v15 }
  0x8b   : > { %676 = vmatpush3.msra.mxu1 %v297_v15 }
  0x8c   : > { %678 = vmatmul.mubr.msk.f32.vlgmr.msra.gmra.mrb[0].mxu1 %vm299_vm0, %v285_v13  ;;  %v287_v16 = vpop.permute.xlu0 %286 }
  0x8d   : > { %680 = vmatprep.mubr.msk.f32.mxu1 %vm299_vm0, %v287_v16 }
  0x90   : > { %681 = vmatmul.mubr.msk.f32.gmra.mrb[2].mxu1 %vm299_vm0, %v289_v17 }
  0x92   : > { %v498_v24 = vpop.permute.xlu1 %497 }
  0x96   : > { %v503_v37 = vpop.permute.xlu1 %502 }
  0x9d   : > { %v493_v22 = vpop.permute.xlu0 %492 }
  0xa1   : > { %v508_v35 = vpop.permute.xlu0 %507 }
  0xe7   : > { %v687_v18 = vpop.f32.mrb[0].mxu0 }
  0xe8   : > { %v467_v19 = vpop.f32.mrb[1].mxu0 }
  0xeb   : > { %v690_v20 = vpop.f32.mrb[2].mxu0 }
  0xec   : > { %v477_v21 = vpop.f32.mrb[3].mxu0 }
 0x15f   : > { %v679_v23 = vpop.f32.mrb[0].mxu1 }
 0x160   : > { %v473_v25 = vadd.f32 %v687_v18, %v679_v23  ;;  %v374_v26 = vpop.f32.mrb[1].mxu1 }
 0x161   : > { %v468_v27 = vadd.f32 %v467_v19, %v374_v26 }
 0x162   : > { %v511_v28 = vadd.f32 %v498_v24, %v473_v25 }
 0x163   : > { %v510_v29 = vadd.f32 %v493_v22, %v468_v27  ;;  %v682_v30 = vpop.f32.mrb[2].mxu1 }
 0x164   : > { %v519_v31 = vmul.f32 0.70710677, %v511_v28  ;;  %v483_v32 = vadd.f32 %v690_v20, %v682_v30  ;;  %v384_v33 = vpop.f32.mrb[3].mxu1  ;;  %v515_v44 = vmul.f32 0.5, %v511_v28 }
 0x165   : > { %v518_v34 = vmul.f32 0.70710677, %v510_v29  ;;  %v478_v36 = vadd.f32 %v477_v21, %v384_v33  ;;  %v514_v46 = vmul.f32 0.5, %v510_v29 }
 0x166   : > { %724 = verf.f32 %v519_v31  ;;  %v513_v38 = vadd.f32 %v508_v35, %v483_v32 }
 0x167   : > { %726 = verf.f32 %v518_v34  ;;  %v512_v39 = vadd.f32 %v503_v37, %v478_v36 }
 0x168   : > { %v521_v40 = vmul.f32 0.70710677, %v513_v38  ;;  %v517_v52 = vmul.f32 0.5, %v513_v38 }
 0x169   : > { %v520_v41 = vmul.f32 0.70710677, %v512_v39  ;;  %v516_v54 = vmul.f32 0.5, %v512_v39 }
 0x16a   : > { %728 = verf.f32 %v521_v40 }
 0x16b   : > { %730 = verf.f32 %v520_v41 }
 0x170   : > { %v725_v42 = vpop.eup %724 }
 0x171   : > { %v727_v43 = vpop.eup %726  ;;  %v527_v45 = vadd.f32 1.0, %v725_v42 }
 0x172   : > { %v526_v47 = vadd.f32 1.0, %v727_v43 }
 0x173   : > { %v531_v48 = vmul.f32 %v527_v45, %v515_v44 }
 0x174   : > { %v729_v49 = vpop.eup %728  ;;  %v530_v50 = vmul.f32 %v526_v47, %v514_v46 }
 0x175   : > { %v731_v51 = vpop.eup %730  ;;  %535 = vst [vmem:[%s266_s26 + $0x8] sm:$0xff] %v531_v48  ;;  %v529_v53 = vadd.f32 1.0, %v729_v49 }
 0x176   : > { %534 = vst [vmem:[%s266_s26] sm:$0xff] %v530_v50  ;;  %v528_v55 = vadd.f32 1.0, %v731_v51 }
 0x177   : > { %v533_v56 = vmul.f32 %v529_v53, %v517_v52 }
 0x178   : > { %v532_v57 = vmul.f32 %v528_v55, %v516_v54 }
 0x179   : > { %537 = vst [vmem:[%s266_s26 + $0x18] sm:$0xff] %v533_v56 }
 0x17a   : > { %536 = vst [vmem:[%s266_s26 + $0x10] sm:$0xff] %v532_v57 }
 0x17b PF: > { %s14_s17 = sadd.s32 1, %s754_s17   ;;  %s861_s15 = smov %s750_s16 }
 0x17c   : > { %p11_p5 = scmp.ge.s32.totalorder %s14_s17, 4   ;;  %s862_s16 = smov %s864_s18 }
 0x17e   :  { %13 = sbr.rel (!%p11_p5) target bundleno = 2 (0x2), region = 69 }

</bundles_post_ra>
